<compile_context>
chip_gen: v7x
topology: tpu7x:2x2x1
jax: 0.10.0
libtpu: 0.0.40
codegen_flags: <defaults>
</compile_context>

<pallas_src>
import jax
import jax.numpy as jnp
from jax.experimental import pallas as pl
from jax.experimental.pallas import tpu as pltpu  # noqa: F401  (TPU backend)

# ---------------- config (small, consistent with the module) ----------------
N = 2                  # batch
L = 8                  # seq_len (value_len == key_len == query_len)
EMBED = 32             # embed_size
HEADS = 4
HEAD_DIM = EMBED // HEADS
FWD_EXP = 4
HIDDEN = FWD_EXP * EMBED
LN_EPS = 1e-5


def _layer_norm(x, gamma, beta):
    # single-pass LN: var = E[x^2] - mean^2 (one reduction sweep, rsqrt on the EUP)
    m = jnp.mean(x, axis=-1, keepdims=True)
    ms = jnp.mean(x * x, axis=-1, keepdims=True)
    var = ms - m * m
    return (x - m) * jax.lax.rsqrt(var + LN_EPS) * gamma + beta


def transformer_block_kernel(x_ref, wqkv_ref, wo_ref, w1_ref, w2_ref,
                             b1_ref, vec_ref, out_ref):
    x = x_ref[...]                                           # (N*L, 3E)  lanes = [v | k | q]

    # fused block-diagonal projection: cols 0:E = v-proj, E:2E = k-proj, 2E:3E = scaled q-proj
    P = jnp.dot(x, wqkv_ref[...], preferred_element_type=jnp.float32)   # (N*L, 3E)

    wo = wo_ref[...]                                         # (E, E) = fc_out.weight.T
    vecs = vec_ref[...]                                      # (8, E) packed row vectors
    bo, g1, bn1 = vecs[0:1, :], vecs[1:2, :], vecs[2:3, :]
    b2, g2, bn2 = vecs[3:4, :], vecs[4:5, :], vecs[5:6, :]

    # ---- attention: static loops over (batch, head); row slices are sublane-aligned ----
    per_batch = []
    for b in range(N):
        Pb = P[b * L:(b + 1) * L, :]                         # (L, 3E)
        PbT = Pb.T                                           # (3E, L): ONE transpose per batch
        acc = jnp.zeros((L, EMBED), jnp.float32)
        for h in range(HEADS):
            d0 = h * HEAD_DIM
            q_h = Pb[:, 2 * EMBED + d0: 2 * EMBED + d0 + HEAD_DIM]   # (L, D), scale pre-folded
            kT_h = PbT[EMBED + d0: EMBED + d0 + HEAD_DIM, :]         # (D, L), sublane slice
            v_h = Pb[:, d0: d0 + HEAD_DIM]                           # (L, D)

            energy = jnp.dot(q_h, kT_h, preferred_element_type=jnp.float32)   # (L, L)
            m = jnp.max(energy, axis=-1, keepdims=True)
            p = jnp.exp(energy - m)
            s = jnp.sum(p, axis=-1, keepdims=True)
            attn = p * pl.reciprocal(s, approx=True)                  # divide -> EUP slot

            head_out = jnp.dot(attn, v_h, preferred_element_type=jnp.float32)  # (L, D)
            # accumulate head_out @ wo[rows of head h]  ==  concat(heads) @ fc_out.weight.T
            acc = acc + jnp.dot(head_out, wo[d0: d0 + HEAD_DIM, :],
                                preferred_element_type=jnp.float32)
        per_batch.append(acc)
    attn_out = jnp.concatenate(per_batch, axis=0) + bo       # (N*L, E)

    # ---- norm1(attention + query); dropout p=0 -> identity ----
    q_in = x[:, 2 * EMBED:]                                  # original (unprojected) query
    x1 = _layer_norm(attn_out + q_in, g1, bn1)

    # ---- feed-forward: Linear -> ReLU -> Linear ----
    h1 = jnp.dot(x1, w1_ref[...], preferred_element_type=jnp.float32) + b1_ref[...]
    h1 = jnp.maximum(h1, 0.0)
    ff = jnp.dot(h1, w2_ref[...], preferred_element_type=jnp.float32) + b2

    # ---- norm2(forward + x) ----
    out_ref[...] = _layer_norm(ff + x1, g2, bn2)


# ------------------------- one-time weight preparation -------------------------
def _block_diag(blocks):
    rows = sum(b.shape[0] for b in blocks)
    cols = sum(b.shape[1] for b in blocks)
    out = jnp.zeros((rows, cols), blocks[0].dtype)
    r = c = 0
    for blk in blocks:
        out = out.at[r:r + blk.shape[0], c:c + blk.shape[1]].set(blk)
        r += blk.shape[0]
        c += blk.shape[1]
    return out


def prepare_params(params):
    """Fold per-head linears + attention scale into one (3E,3E) weight; pack small vectors."""
    (wv, wk, wq, wo, bo, g1, bn1, w1, b1, w2, b2, g2, bn2) = params
    scale = 1.0 / (float(EMBED) ** 0.5)
    wv_bd = _block_diag([wv.T] * HEADS)                 # (E, E): x @ wv_bd == per-head x @ wv.T
    wk_bd = _block_diag([wk.T] * HEADS)
    wq_bd = _block_diag([wq.T] * HEADS) * scale         # fold 1/sqrt(E) into the query proj
    wqkv = _block_diag([wv_bd, wk_bd, wq_bd])           # (3E, 3E)
    vec_pack = jnp.concatenate(
        [jnp.stack([bo, g1, bn1, b2, g2, bn2]),
         jnp.zeros((2, EMBED), jnp.float32)], axis=0)   # (8, E)
    return (wqkv, wo.T, w1.T, w2.T, b1.reshape(1, HIDDEN), vec_pack)


@jax.jit
def transformer_block(value, key, query, prepared):
    """value/key/query: (N, L, EMBED) float32; prepared = prepare_params(params)."""
    wqkv, wo_t, w1_t, w2_t, b1_row, vec_pack = prepared
    # lane-concatenate v|k|q and collapse the batch: (N*L, 3E)
    x = jnp.concatenate([value, key, query], axis=-1).reshape(N * L, 3 * EMBED)
    out = pl.pallas_call(
        transformer_block_kernel,
        out_shape=jax.ShapeDtypeStruct((N * L, EMBED), jnp.float32),
    )(x, wqkv, wo_t, w1_t, w2_t, b1_row, vec_pack)
    return out.reshape(N, L, EMBED)


# ------------------------- pure-JAX reference (for checking) -------------------------
def reference(value, key, query, params):
    (wv, wk, wq, wo, bo, g1, bn1, w1, b1, w2, b2, g2, bn2) = params
    n, l, _ = query.shape

    def proj(x, w):
        xh = x.reshape(n, l, HEADS, HEAD_DIM)
        return jnp.einsum('nlhd,ed->nlhe', xh, w)     # per-head Linear (no bias)

    vs, ks, qs = proj(value, wv), proj(key, wk), proj(query, wq)
    energy = jnp.einsum('nqhd,nkhd->nhqk', qs, ks)
    attn = jax.nn.softmax(energy / (EMBED ** 0.5), axis=3)
    out = jnp.einsum('nhql,nlhd->nqhd', attn, vs).reshape(n, l, EMBED)
    out = out @ wo.T + bo

    def ln(x, g, b):
        m = jnp.mean(x, -1, keepdims=True)
        v_ = jnp.mean((x - m) ** 2, -1, keepdims=True)
        return (x - m) / jnp.sqrt(v_ + LN_EPS) * g + b

    x = ln(out + query, g1, bn1)
    ff = jnp.maximum(x @ w1.T + b1, 0.0) @ w2.T + b2
    return ln(ff + x, g2, bn2)


if __name__ == "__main__":
    key0 = jax.random.PRNGKey(0)
    ks = jax.random.split(key0, 16)

    def init(k, shape, fan_in):
        bound = 1.0 / (fan_in ** 0.5)
        return jax.random.uniform(k, shape, jnp.float32, -bound, bound)

    # parameters (deterministic, nn.Linear-style shapes)
    wv = init(ks[0], (HEAD_DIM, HEAD_DIM), HEAD_DIM)
    wk = init(ks[1], (HEAD_DIM, HEAD_DIM), HEAD_DIM)
    wq = init(ks[2], (HEAD_DIM, HEAD_DIM), HEAD_DIM)
    wo = init(ks[3], (EMBED, EMBED), EMBED)
    bo = init(ks[4], (EMBED,), EMBED)
    g1 = jnp.ones((EMBED,), jnp.float32)
    bn1 = jnp.zeros((EMBED,), jnp.float32)
    w1 = init(ks[5], (HIDDEN, EMBED), EMBED)
    b1 = init(ks[6], (HIDDEN,), EMBED)
    w2 = init(ks[7], (EMBED, HIDDEN), HIDDEN)
    b2 = init(ks[8], (EMBED,), HIDDEN)
    g2 = jnp.ones((EMBED,), jnp.float32)
    bn2 = jnp.zeros((EMBED,), jnp.float32)
    params = (wv, wk, wq, wo, bo, g1, bn1, w1, b1, w2, b2, g2, bn2)

    value = jax.random.normal(ks[9], (N, L, EMBED), jnp.float32)
    key_t = jax.random.normal(ks[10], (N, L, EMBED), jnp.float32)
    query = jax.random.normal(ks[11], (N, L, EMBED), jnp.float32)

    prepared = prepare_params(params)          # weight folding done once, outside the call
    out = transformer_block(value, key_t, query, prepared)
    out = jax.block_until_ready(out)

    ref = reference(value, key_t, query, params)
    assert out.shape == (N, L, EMBED)
    # slightly looser tolerance: EUP approx reciprocal in softmax + single-pass LN variance
    assert jnp.allclose(out, ref, atol=2e-3, rtol=2e-3), "mismatch vs JAX reference"

    print("KERNEL_OK")
</pallas_src>

<mosaic_0001>
module attributes {stable_mosaic.version = 11 : i64} {
  func.func @transformer_block_kernel(%arg0: memref<16x96xf32, #tpu.memory_space<vmem>>, %arg1: memref<96x96xf32, #tpu.memory_space<vmem>>, %arg2: memref<32x32xf32, #tpu.memory_space<vmem>>, %arg3: memref<32x128xf32, #tpu.memory_space<vmem>>, %arg4: memref<128x32xf32, #tpu.memory_space<vmem>>, %arg5: memref<1x128xf32, #tpu.memory_space<vmem>>, %arg6: memref<8x32xf32, #tpu.memory_space<vmem>>, %arg7: memref<16x32xf32, #tpu.memory_space<vmem>>) attributes {dimension_semantics = [], scalar_prefetch = 0 : i64, scratch_operands = 0 : i64, tpu.core_type = #tpu.core_type<tc>} {
    %c0 = arith.constant 0 : index
    %c0_0 = arith.constant 0 : index
    %0 = vector.load %arg0[%c0, %c0_0] : memref<16x96xf32, #tpu.memory_space<vmem>>, vector<16x96xf32>
    %c0_1 = arith.constant 0 : index
    %c0_2 = arith.constant 0 : index
    %1 = vector.load %arg1[%c0_1, %c0_2] : memref<96x96xf32, #tpu.memory_space<vmem>>, vector<96x96xf32>
    %cst = arith.constant dense<0.000000e+00> : vector<16x96xf32>
    %2 = tpu.matmul %0, %1, %cst {dimension_numbers = #tpu.dot_dimension_numbers<[1], [0], [0], [1], [0, 0, 1, 1], [], []>} : vector<16x96xf32>, vector<96x96xf32>, vector<16x96xf32> -> vector<16x96xf32>
    %c0_3 = arith.constant 0 : index
    %c0_4 = arith.constant 0 : index
    %3 = vector.load %arg2[%c0_3, %c0_4] : memref<32x32xf32, #tpu.memory_space<vmem>>, vector<32x32xf32>
    %c0_5 = arith.constant 0 : index
    %c0_6 = arith.constant 0 : index
    %4 = vector.load %arg6[%c0_5, %c0_6] : memref<8x32xf32, #tpu.memory_space<vmem>>, vector<8x32xf32>
    %5 = vector.extract_strided_slice %4 {offsets = [0, 0], sizes = [1, 32], strides = [1, 1]} : vector<8x32xf32> to vector<1x32xf32>
    %6 = vector.extract_strided_slice %4 {offsets = [1, 0], sizes = [1, 32], strides = [1, 1]} : vector<8x32xf32> to vector<1x32xf32>
    %7 = vector.extract_strided_slice %4 {offsets = [2, 0], sizes = [1, 32], strides = [1, 1]} : vector<8x32xf32> to vector<1x32xf32>
    %8 = vector.extract_strided_slice %4 {offsets = [3, 0], sizes = [1, 32], strides = [1, 1]} : vector<8x32xf32> to vector<1x32xf32>
    %9 = vector.extract_strided_slice %4 {offsets = [4, 0], sizes = [1, 32], strides = [1, 1]} : vector<8x32xf32> to vector<1x32xf32>
    %10 = vector.extract_strided_slice %4 {offsets = [5, 0], sizes = [1, 32], strides = [1, 1]} : vector<8x32xf32> to vector<1x32xf32>
    %11 = vector.extract_strided_slice %2 {offsets = [0, 0], sizes = [8, 96], strides = [1, 1]} : vector<16x96xf32> to vector<8x96xf32>
    %12 = tpu.transpose %11, [1, 0] : vector<8x96xf32> -> vector<96x8xf32>
    %cst_7 = arith.constant 0.000000e+00 : f32
    %13 = vector.broadcast %cst_7 : f32 to vector<8x32xf32>
    %14 = vector.extract_strided_slice %11 {offsets = [0, 64], sizes = [8, 8], strides = [1, 1]} : vector<8x96xf32> to vector<8x8xf32>
    %15 = vector.extract_strided_slice %12 {offsets = [32, 0], sizes = [8, 8], strides = [1, 1]} : vector<96x8xf32> to vector<8x8xf32>
    %16 = vector.extract_strided_slice %11 {offsets = [0, 0], sizes = [8, 8], strides = [1, 1]} : vector<8x96xf32> to vector<8x8xf32>
    %cst_8 = arith.constant dense<0.000000e+00> : vector<8x8xf32>
    %17 = tpu.matmul %14, %15, %cst_8 {dimension_numbers = #tpu.dot_dimension_numbers<[1], [0], [0], [1], [0, 0, 1, 1], [], []>} : vector<8x8xf32>, vector<8x8xf32>, vector<8x8xf32> -> vector<8x8xf32>
    %cst_9 = arith.constant dense<0xFF800000> : vector<8xf32>
    %18 = vector.multi_reduction <maximumf>, %17, %cst_9 [1] : vector<8x8xf32> to vector<8xf32>
    %19 = vector.shape_cast %18 : vector<8xf32> to vector<8x1xf32>
    %20 = vector.broadcast %19 : vector<8x1xf32> to vector<8x8xf32>
    %21 = arith.subf %17, %20 : vector<8x8xf32>
    %22 = math.exp %21 : vector<8x8xf32>
    %cst_10 = arith.constant dense<0.000000e+00> : vector<8xf32>
    %23 = vector.multi_reduction <add>, %22, %cst_10 [1] : vector<8x8xf32> to vector<8xf32>
    %24 = vector.shape_cast %23 : vector<8xf32> to vector<8x1xf32>
    %25 = tpu.reciprocal %24 {approx = true} : vector<8x1xf32> -> vector<8x1xf32>
    %26 = vector.broadcast %25 : vector<8x1xf32> to vector<8x8xf32>
    %27 = arith.mulf %22, %26 : vector<8x8xf32>
    %cst_11 = arith.constant dense<0.000000e+00> : vector<8x8xf32>
    %28 = tpu.matmul %27, %16, %cst_11 {dimension_numbers = #tpu.dot_dimension_numbers<[1], [0], [0], [1], [0, 0, 1, 1], [], []>} : vector<8x8xf32>, vector<8x8xf32>, vector<8x8xf32> -> vector<8x8xf32>
    %29 = vector.extract_strided_slice %3 {offsets = [0, 0], sizes = [8, 32], strides = [1, 1]} : vector<32x32xf32> to vector<8x32xf32>
    %cst_12 = arith.constant dense<0.000000e+00> : vector<8x32xf32>
    %30 = tpu.matmul %28, %29, %cst_12 {dimension_numbers = #tpu.dot_dimension_numbers<[1], [0], [0], [1], [0, 0, 1, 1], [], []>} : vector<8x8xf32>, vector<8x32xf32>, vector<8x32xf32> -> vector<8x32xf32>
    %31 = arith.addf %13, %30 : vector<8x32xf32>
    %32 = vector.extract_strided_slice %11 {offsets = [0, 72], sizes = [8, 8], strides = [1, 1]} : vector<8x96xf32> to vector<8x8xf32>
    %33 = vector.extract_strided_slice %12 {offsets = [40, 0], sizes = [8, 8], strides = [1, 1]} : vector<96x8xf32> to vector<8x8xf32>
    %34 = vector.extract_strided_slice %11 {offsets = [0, 8], sizes = [8, 8], strides = [1, 1]} : vector<8x96xf32> to vector<8x8xf32>
    %cst_13 = arith.constant dense<0.000000e+00> : vector<8x8xf32>
    %35 = tpu.matmul %32, %33, %cst_13 {dimension_numbers = #tpu.dot_dimension_numbers<[1], [0], [0], [1], [0, 0, 1, 1], [], []>} : vector<8x8xf32>, vector<8x8xf32>, vector<8x8xf32> -> vector<8x8xf32>
    %cst_14 = arith.constant dense<0xFF800000> : vector<8xf32>
    %36 = vector.multi_reduction <maximumf>, %35, %cst_14 [1] : vector<8x8xf32> to vector<8xf32>
    %37 = vector.shape_cast %36 : vector<8xf32> to vector<8x1xf32>
    %38 = vector.broadcast %37 : vector<8x1xf32> to vector<8x8xf32>
    %39 = arith.subf %35, %38 : vector<8x8xf32>
    %40 = math.exp %39 : vector<8x8xf32>
    %cst_15 = arith.constant dense<0.000000e+00> : vector<8xf32>
    %41 = vector.multi_reduction <add>, %40, %cst_15 [1] : vector<8x8xf32> to vector<8xf32>
    %42 = vector.shape_cast %41 : vector<8xf32> to vector<8x1xf32>
    %43 = tpu.reciprocal %42 {approx = true} : vector<8x1xf32> -> vector<8x1xf32>
    %44 = vector.broadcast %43 : vector<8x1xf32> to vector<8x8xf32>
    %45 = arith.mulf %40, %44 : vector<8x8xf32>
    %cst_16 = arith.constant dense<0.000000e+00> : vector<8x8xf32>
    %46 = tpu.matmul %45, %34, %cst_16 {dimension_numbers = #tpu.dot_dimension_numbers<[1], [0], [0], [1], [0, 0, 1, 1], [], []>} : vector<8x8xf32>, vector<8x8xf32>, vector<8x8xf32> -> vector<8x8xf32>
    %47 = vector.extract_strided_slice %3 {offsets = [8, 0], sizes = [8, 32], strides = [1, 1]} : vector<32x32xf32> to vector<8x32xf32>
    %cst_17 = arith.constant dense<0.000000e+00> : vector<8x32xf32>
    %48 = tpu.matmul %46, %47, %cst_17 {dimension_numbers = #tpu.dot_dimension_numbers<[1], [0], [0], [1], [0, 0, 1, 1], [], []>} : vector<8x8xf32>, vector<8x32xf32>, vector<8x32xf32> -> vector<8x32xf32>
    %49 = arith.addf %31, %48 : vector<8x32xf32>
    %50 = vector.extract_strided_slice %11 {offsets = [0, 80], sizes = [8, 8], strides = [1, 1]} : vector<8x96xf32> to vector<8x8xf32>
    %51 = vector.extract_strided_slice %12 {offsets = [48, 0], sizes = [8, 8], strides = [1, 1]} : vector<96x8xf32> to vector<8x8xf32>
    %52 = vector.extract_strided_slice %11 {offsets = [0, 16], sizes = [8, 8], strides = [1, 1]} : vector<8x96xf32> to vector<8x8xf32>
    %cst_18 = arith.constant dense<0.000000e+00> : vector<8x8xf32>
    %53 = tpu.matmul %50, %51, %cst_18 {dimension_numbers = #tpu.dot_dimension_numbers<[1], [0], [0], [1], [0, 0, 1, 1], [], []>} : vector<8x8xf32>, vector<8x8xf32>, vector<8x8xf32> -> vector<8x8xf32>
    %cst_19 = arith.constant dense<0xFF800000> : vector<8xf32>
    %54 = vector.multi_reduction <maximumf>, %53, %cst_19 [1] : vector<8x8xf32> to vector<8xf32>
    %55 = vector.shape_cast %54 : vector<8xf32> to vector<8x1xf32>
    %56 = vector.broadcast %55 : vector<8x1xf32> to vector<8x8xf32>
    %57 = arith.subf %53, %56 : vector<8x8xf32>
    %58 = math.exp %57 : vector<8x8xf32>
    %cst_20 = arith.constant dense<0.000000e+00> : vector<8xf32>
    %59 = vector.multi_reduction <add>, %58, %cst_20 [1] : vector<8x8xf32> to vector<8xf32>
    %60 = vector.shape_cast %59 : vector<8xf32> to vector<8x1xf32>
    %61 = tpu.reciprocal %60 {approx = true} : vector<8x1xf32> -> vector<8x1xf32>
    %62 = vector.broadcast %61 : vector<8x1xf32> to vector<8x8xf32>
    %63 = arith.mulf %58, %62 : vector<8x8xf32>
    %cst_21 = arith.constant dense<0.000000e+00> : vector<8x8xf32>
    %64 = tpu.matmul %63, %52, %cst_21 {dimension_numbers = #tpu.dot_dimension_numbers<[1], [0], [0], [1], [0, 0, 1, 1], [], []>} : vector<8x8xf32>, vector<8x8xf32>, vector<8x8xf32> -> vector<8x8xf32>
    %65 = vector.extract_strided_slice %3 {offsets = [16, 0], sizes = [8, 32], strides = [1, 1]} : vector<32x32xf32> to vector<8x32xf32>
    %cst_22 = arith.constant dense<0.000000e+00> : vector<8x32xf32>
    %66 = tpu.matmul %64, %65, %cst_22 {dimension_numbers = #tpu.dot_dimension_numbers<[1], [0], [0], [1], [0, 0, 1, 1], [], []>} : vector<8x8xf32>, vector<8x32xf32>, vector<8x32xf32> -> vector<8x32xf32>
    %67 = arith.addf %49, %66 : vector<8x32xf32>
    %68 = vector.extract_strided_slice %11 {offsets = [0, 88], sizes = [8, 8], strides = [1, 1]} : vector<8x96xf32> to vector<8x8xf32>
    %69 = vector.extract_strided_slice %12 {offsets = [56, 0], sizes = [8, 8], strides = [1, 1]} : vector<96x8xf32> to vector<8x8xf32>
    %70 = vector.extract_strided_slice %11 {offsets = [0, 24], sizes = [8, 8], strides = [1, 1]} : vector<8x96xf32> to vector<8x8xf32>
    %cst_23 = arith.constant dense<0.000000e+00> : vector<8x8xf32>
    %71 = tpu.matmul %68, %69, %cst_23 {dimension_numbers = #tpu.dot_dimension_numbers<[1], [0], [0], [1], [0, 0, 1, 1], [], []>} : vector<8x8xf32>, vector<8x8xf32>, vector<8x8xf32> -> vector<8x8xf32>
    %cst_24 = arith.constant dense<0xFF800000> : vector<8xf32>
    %72 = vector.multi_reduction <maximumf>, %71, %cst_24 [1] : vector<8x8xf32> to vector<8xf32>
    %73 = vector.shape_cast %72 : vector<8xf32> to vector<8x1xf32>
    %74 = vector.broadcast %73 : vector<8x1xf32> to vector<8x8xf32>
    %75 = arith.subf %71, %74 : vector<8x8xf32>
    %76 = math.exp %75 : vector<8x8xf32>
    %cst_25 = arith.constant dense<0.000000e+00> : vector<8xf32>
    %77 = vector.multi_reduction <add>, %76, %cst_25 [1] : vector<8x8xf32> to vector<8xf32>
    %78 = vector.shape_cast %77 : vector<8xf32> to vector<8x1xf32>
    %79 = tpu.reciprocal %78 {approx = true} : vector<8x1xf32> -> vector<8x1xf32>
    %80 = vector.broadcast %79 : vector<8x1xf32> to vector<8x8xf32>
    %81 = arith.mulf %76, %80 : vector<8x8xf32>
    %cst_26 = arith.constant dense<0.000000e+00> : vector<8x8xf32>
    %82 = tpu.matmul %81, %70, %cst_26 {dimension_numbers = #tpu.dot_dimension_numbers<[1], [0], [0], [1], [0, 0, 1, 1], [], []>} : vector<8x8xf32>, vector<8x8xf32>, vector<8x8xf32> -> vector<8x8xf32>
    %83 = vector.extract_strided_slice %3 {offsets = [24, 0], sizes = [8, 32], strides = [1, 1]} : vector<32x32xf32> to vector<8x32xf32>
    %cst_27 = arith.constant dense<0.000000e+00> : vector<8x32xf32>
    %84 = tpu.matmul %82, %83, %cst_27 {dimension_numbers = #tpu.dot_dimension_numbers<[1], [0], [0], [1], [0, 0, 1, 1], [], []>} : vector<8x8xf32>, vector<8x32xf32>, vector<8x32xf32> -> vector<8x32xf32>
    %85 = arith.addf %67, %84 : vector<8x32xf32>
    %86 = vector.extract_strided_slice %2 {offsets = [8, 0], sizes = [8, 96], strides = [1, 1]} : vector<16x96xf32> to vector<8x96xf32>
    %87 = tpu.transpose %86, [1, 0] : vector<8x96xf32> -> vector<96x8xf32>
    %cst_28 = arith.constant 0.000000e+00 : f32
    %88 = vector.broadcast %cst_28 : f32 to vector<8x32xf32>
    %89 = vector.extract_strided_slice %86 {offsets = [0, 64], sizes = [8, 8], strides = [1, 1]} : vector<8x96xf32> to vector<8x8xf32>
    %90 = vector.extract_strided_slice %87 {offsets = [32, 0], sizes = [8, 8], strides = [1, 1]} : vector<96x8xf32> to vector<8x8xf32>
    %91 = vector.extract_strided_slice %86 {offsets = [0, 0], sizes = [8, 8], strides = [1, 1]} : vector<8x96xf32> to vector<8x8xf32>
    %cst_29 = arith.constant dense<0.000000e+00> : vector<8x8xf32>
    %92 = tpu.matmul %89, %90, %cst_29 {dimension_numbers = #tpu.dot_dimension_numbers<[1], [0], [0], [1], [0, 0, 1, 1], [], []>} : vector<8x8xf32>, vector<8x8xf32>, vector<8x8xf32> -> vector<8x8xf32>
    %cst_30 = arith.constant dense<0xFF800000> : vector<8xf32>
    %93 = vector.multi_reduction <maximumf>, %92, %cst_30 [1] : vector<8x8xf32> to vector<8xf32>
    %94 = vector.shape_cast %93 : vector<8xf32> to vector<8x1xf32>
    %95 = vector.broadcast %94 : vector<8x1xf32> to vector<8x8xf32>
    %96 = arith.subf %92, %95 : vector<8x8xf32>
    %97 = math.exp %96 : vector<8x8xf32>
    %cst_31 = arith.constant dense<0.000000e+00> : vector<8xf32>
    %98 = vector.multi_reduction <add>, %97, %cst_31 [1] : vector<8x8xf32> to vector<8xf32>
    %99 = vector.shape_cast %98 : vector<8xf32> to vector<8x1xf32>
    %100 = tpu.reciprocal %99 {approx = true} : vector<8x1xf32> -> vector<8x1xf32>
    %101 = vector.broadcast %100 : vector<8x1xf32> to vector<8x8xf32>
    %102 = arith.mulf %97, %101 : vector<8x8xf32>
    %cst_32 = arith.constant dense<0.000000e+00> : vector<8x8xf32>
    %103 = tpu.matmul %102, %91, %cst_32 {dimension_numbers = #tpu.dot_dimension_numbers<[1], [0], [0], [1], [0, 0, 1, 1], [], []>} : vector<8x8xf32>, vector<8x8xf32>, vector<8x8xf32> -> vector<8x8xf32>
    %104 = vector.extract_strided_slice %3 {offsets = [0, 0], sizes = [8, 32], strides = [1, 1]} : vector<32x32xf32> to vector<8x32xf32>
    %cst_33 = arith.constant dense<0.000000e+00> : vector<8x32xf32>
    %105 = tpu.matmul %103, %104, %cst_33 {dimension_numbers = #tpu.dot_dimension_numbers<[1], [0], [0], [1], [0, 0, 1, 1], [], []>} : vector<8x8xf32>, vector<8x32xf32>, vector<8x32xf32> -> vector<8x32xf32>
    %106 = arith.addf %88, %105 : vector<8x32xf32>
    %107 = vector.extract_strided_slice %86 {offsets = [0, 72], sizes = [8, 8], strides = [1, 1]} : vector<8x96xf32> to vector<8x8xf32>
    %108 = vector.extract_strided_slice %87 {offsets = [40, 0], sizes = [8, 8], strides = [1, 1]} : vector<96x8xf32> to vector<8x8xf32>
    %109 = vector.extract_strided_slice %86 {offsets = [0, 8], sizes = [8, 8], strides = [1, 1]} : vector<8x96xf32> to vector<8x8xf32>
    %cst_34 = arith.constant dense<0.000000e+00> : vector<8x8xf32>
    %110 = tpu.matmul %107, %108, %cst_34 {dimension_numbers = #tpu.dot_dimension_numbers<[1], [0], [0], [1], [0, 0, 1, 1], [], []>} : vector<8x8xf32>, vector<8x8xf32>, vector<8x8xf32> -> vector<8x8xf32>
    %cst_35 = arith.constant dense<0xFF800000> : vector<8xf32>
    %111 = vector.multi_reduction <maximumf>, %110, %cst_35 [1] : vector<8x8xf32> to vector<8xf32>
    %112 = vector.shape_cast %111 : vector<8xf32> to vector<8x1xf32>
    %113 = vector.broadcast %112 : vector<8x1xf32> to vector<8x8xf32>
    %114 = arith.subf %110, %113 : vector<8x8xf32>
    %115 = math.exp %114 : vector<8x8xf32>
    %cst_36 = arith.constant dense<0.000000e+00> : vector<8xf32>
    %116 = vector.multi_reduction <add>, %115, %cst_36 [1] : vector<8x8xf32> to vector<8xf32>
    %117 = vector.shape_cast %116 : vector<8xf32> to vector<8x1xf32>
    %118 = tpu.reciprocal %117 {approx = true} : vector<8x1xf32> -> vector<8x1xf32>
    %119 = vector.broadcast %118 : vector<8x1xf32> to vector<8x8xf32>
    %120 = arith.mulf %115, %119 : vector<8x8xf32>
    %cst_37 = arith.constant dense<0.000000e+00> : vector<8x8xf32>
    %121 = tpu.matmul %120, %109, %cst_37 {dimension_numbers = #tpu.dot_dimension_numbers<[1], [0], [0], [1], [0, 0, 1, 1], [], []>} : vector<8x8xf32>, vector<8x8xf32>, vector<8x8xf32> -> vector<8x8xf32>
    %122 = vector.extract_strided_slice %3 {offsets = [8, 0], sizes = [8, 32], strides = [1, 1]} : vector<32x32xf32> to vector<8x32xf32>
    %cst_38 = arith.constant dense<0.000000e+00> : vector<8x32xf32>
    %123 = tpu.matmul %121, %122, %cst_38 {dimension_numbers = #tpu.dot_dimension_numbers<[1], [0], [0], [1], [0, 0, 1, 1], [], []>} : vector<8x8xf32>, vector<8x32xf32>, vector<8x32xf32> -> vector<8x32xf32>
    %124 = arith.addf %106, %123 : vector<8x32xf32>
    %125 = vector.extract_strided_slice %86 {offsets = [0, 80], sizes = [8, 8], strides = [1, 1]} : vector<8x96xf32> to vector<8x8xf32>
    %126 = vector.extract_strided_slice %87 {offsets = [48, 0], sizes = [8, 8], strides = [1, 1]} : vector<96x8xf32> to vector<8x8xf32>
    %127 = vector.extract_strided_slice %86 {offsets = [0, 16], sizes = [8, 8], strides = [1, 1]} : vector<8x96xf32> to vector<8x8xf32>
    %cst_39 = arith.constant dense<0.000000e+00> : vector<8x8xf32>
    %128 = tpu.matmul %125, %126, %cst_39 {dimension_numbers = #tpu.dot_dimension_numbers<[1], [0], [0], [1], [0, 0, 1, 1], [], []>} : vector<8x8xf32>, vector<8x8xf32>, vector<8x8xf32> -> vector<8x8xf32>
    %cst_40 = arith.constant dense<0xFF800000> : vector<8xf32>
    %129 = vector.multi_reduction <maximumf>, %128, %cst_40 [1] : vector<8x8xf32> to vector<8xf32>
    %130 = vector.shape_cast %129 : vector<8xf32> to vector<8x1xf32>
    %131 = vector.broadcast %130 : vector<8x1xf32> to vector<8x8xf32>
    %132 = arith.subf %128, %131 : vector<8x8xf32>
    %133 = math.exp %132 : vector<8x8xf32>
    %cst_41 = arith.constant dense<0.000000e+00> : vector<8xf32>
    %134 = vector.multi_reduction <add>, %133, %cst_41 [1] : vector<8x8xf32> to vector<8xf32>
    %135 = vector.shape_cast %134 : vector<8xf32> to vector<8x1xf32>
    %136 = tpu.reciprocal %135 {approx = true} : vector<8x1xf32> -> vector<8x1xf32>
    %137 = vector.broadcast %136 : vector<8x1xf32> to vector<8x8xf32>
    %138 = arith.mulf %133, %137 : vector<8x8xf32>
    %cst_42 = arith.constant dense<0.000000e+00> : vector<8x8xf32>
    %139 = tpu.matmul %138, %127, %cst_42 {dimension_numbers = #tpu.dot_dimension_numbers<[1], [0], [0], [1], [0, 0, 1, 1], [], []>} : vector<8x8xf32>, vector<8x8xf32>, vector<8x8xf32> -> vector<8x8xf32>
    %140 = vector.extract_strided_slice %3 {offsets = [16, 0], sizes = [8, 32], strides = [1, 1]} : vector<32x32xf32> to vector<8x32xf32>
    %cst_43 = arith.constant dense<0.000000e+00> : vector<8x32xf32>
    %141 = tpu.matmul %139, %140, %cst_43 {dimension_numbers = #tpu.dot_dimension_numbers<[1], [0], [0], [1], [0, 0, 1, 1], [], []>} : vector<8x8xf32>, vector<8x32xf32>, vector<8x32xf32> -> vector<8x32xf32>
    %142 = arith.addf %124, %141 : vector<8x32xf32>
    %143 = vector.extract_strided_slice %86 {offsets = [0, 88], sizes = [8, 8], strides = [1, 1]} : vector<8x96xf32> to vector<8x8xf32>
    %144 = vector.extract_strided_slice %87 {offsets = [56, 0], sizes = [8, 8], strides = [1, 1]} : vector<96x8xf32> to vector<8x8xf32>
    %145 = vector.extract_strided_slice %86 {offsets = [0, 24], sizes = [8, 8], strides = [1, 1]} : vector<8x96xf32> to vector<8x8xf32>
    %cst_44 = arith.constant dense<0.000000e+00> : vector<8x8xf32>
    %146 = tpu.matmul %143, %144, %cst_44 {dimension_numbers = #tpu.dot_dimension_numbers<[1], [0], [0], [1], [0, 0, 1, 1], [], []>} : vector<8x8xf32>, vector<8x8xf32>, vector<8x8xf32> -> vector<8x8xf32>
    %cst_45 = arith.constant dense<0xFF800000> : vector<8xf32>
    %147 = vector.multi_reduction <maximumf>, %146, %cst_45 [1] : vector<8x8xf32> to vector<8xf32>
    %148 = vector.shape_cast %147 : vector<8xf32> to vector<8x1xf32>
    %149 = vector.broadcast %148 : vector<8x1xf32> to vector<8x8xf32>
    %150 = arith.subf %146, %149 : vector<8x8xf32>
    %151 = math.exp %150 : vector<8x8xf32>
    %cst_46 = arith.constant dense<0.000000e+00> : vector<8xf32>
    %152 = vector.multi_reduction <add>, %151, %cst_46 [1] : vector<8x8xf32> to vector<8xf32>
    %153 = vector.shape_cast %152 : vector<8xf32> to vector<8x1xf32>
    %154 = tpu.reciprocal %153 {approx = true} : vector<8x1xf32> -> vector<8x1xf32>
    %155 = vector.broadcast %154 : vector<8x1xf32> to vector<8x8xf32>
    %156 = arith.mulf %151, %155 : vector<8x8xf32>
    %cst_47 = arith.constant dense<0.000000e+00> : vector<8x8xf32>
    %157 = tpu.matmul %156, %145, %cst_47 {dimension_numbers = #tpu.dot_dimension_numbers<[1], [0], [0], [1], [0, 0, 1, 1], [], []>} : vector<8x8xf32>, vector<8x8xf32>, vector<8x8xf32> -> vector<8x8xf32>
    %158 = vector.extract_strided_slice %3 {offsets = [24, 0], sizes = [8, 32], strides = [1, 1]} : vector<32x32xf32> to vector<8x32xf32>
    %cst_48 = arith.constant dense<0.000000e+00> : vector<8x32xf32>
    %159 = tpu.matmul %157, %158, %cst_48 {dimension_numbers = #tpu.dot_dimension_numbers<[1], [0], [0], [1], [0, 0, 1, 1], [], []>} : vector<8x8xf32>, vector<8x32xf32>, vector<8x32xf32> -> vector<8x32xf32>
    %160 = arith.addf %142, %159 : vector<8x32xf32>
    %161 = tpu.concatenate %85, %160 in 0 : vector<8x32xf32>, vector<8x32xf32> -> vector<16x32xf32>
    %162 = vector.broadcast %5 : vector<1x32xf32> to vector<16x32xf32>
    %163 = arith.addf %161, %162 : vector<16x32xf32>
    %164 = vector.extract_strided_slice %0 {offsets = [0, 64], sizes = [16, 32], strides = [1, 1]} : vector<16x96xf32> to vector<16x32xf32>
    %165 = arith.addf %163, %164 : vector<16x32xf32>
    %cst_49 = arith.constant dense<0.000000e+00> : vector<16xf32>
    %166 = vector.multi_reduction <add>, %165, %cst_49 [1] : vector<16x32xf32> to vector<16xf32>
    %167 = vector.shape_cast %166 : vector<16xf32> to vector<16x1xf32>
    %cst_50 = arith.constant 3.200000e+01 : f32
    %168 = vector.broadcast %cst_50 : f32 to vector<16x1xf32>
    %169 = arith.divf %167, %168 : vector<16x1xf32>
    %170 = arith.mulf %165, %165 : vector<16x32xf32>
    %cst_51 = arith.constant dense<0.000000e+00> : vector<16xf32>
    %171 = vector.multi_reduction <add>, %170, %cst_51 [1] : vector<16x32xf32> to vector<16xf32>
    %172 = vector.shape_cast %171 : vector<16xf32> to vector<16x1xf32>
    %cst_52 = arith.constant 3.200000e+01 : f32
    %173 = vector.broadcast %cst_52 : f32 to vector<16x1xf32>
    %174 = arith.divf %172, %173 : vector<16x1xf32>
    %175 = arith.mulf %169, %169 : vector<16x1xf32>
    %176 = arith.subf %174, %175 : vector<16x1xf32>
    %177 = vector.broadcast %169 : vector<16x1xf32> to vector<16x32xf32>
    %178 = arith.subf %165, %177 : vector<16x32xf32>
    %cst_53 = arith.constant 9.99999974E-6 : f32
    %179 = vector.broadcast %cst_53 : f32 to vector<16x1xf32>
    %180 = arith.addf %176, %179 : vector<16x1xf32>
    %181 = math.rsqrt %180 : vector<16x1xf32>
    %182 = vector.broadcast %181 : vector<16x1xf32> to vector<16x32xf32>
    %183 = arith.mulf %178, %182 : vector<16x32xf32>
    %184 = vector.broadcast %6 : vector<1x32xf32> to vector<16x32xf32>
    %185 = arith.mulf %183, %184 : vector<16x32xf32>
    %186 = vector.broadcast %7 : vector<1x32xf32> to vector<16x32xf32>
    %187 = arith.addf %185, %186 : vector<16x32xf32>
    %c0_54 = arith.constant 0 : index
    %c0_55 = arith.constant 0 : index
    %188 = vector.load %arg3[%c0_54, %c0_55] : memref<32x128xf32, #tpu.memory_space<vmem>>, vector<32x128xf32>
    %cst_56 = arith.constant dense<0.000000e+00> : vector<16x128xf32>
    %189 = tpu.matmul %187, %188, %cst_56 {dimension_numbers = #tpu.dot_dimension_numbers<[1], [0], [0], [1], [0, 0, 1, 1], [], []>} : vector<16x32xf32>, vector<32x128xf32>, vector<16x128xf32> -> vector<16x128xf32>
    %c0_57 = arith.constant 0 : index
    %c0_58 = arith.constant 0 : index
    %190 = vector.load %arg5[%c0_57, %c0_58] : memref<1x128xf32, #tpu.memory_space<vmem>>, vector<1x128xf32>
    %191 = vector.broadcast %190 : vector<1x128xf32> to vector<16x128xf32>
    %192 = arith.addf %189, %191 : vector<16x128xf32>
    %cst_59 = arith.constant 0.000000e+00 : f32
    %193 = vector.broadcast %cst_59 : f32 to vector<16x128xf32>
    %194 = arith.maximumf %192, %193 : vector<16x128xf32>
    %c0_60 = arith.constant 0 : index
    %c0_61 = arith.constant 0 : index
    %195 = vector.load %arg4[%c0_60, %c0_61] : memref<128x32xf32, #tpu.memory_space<vmem>>, vector<128x32xf32>
    %cst_62 = arith.constant dense<0.000000e+00> : vector<16x32xf32>
    %196 = tpu.matmul %194, %195, %cst_62 {dimension_numbers = #tpu.dot_dimension_numbers<[1], [0], [0], [1], [0, 0, 1, 1], [], []>} : vector<16x128xf32>, vector<128x32xf32>, vector<16x32xf32> -> vector<16x32xf32>
    %197 = vector.broadcast %8 : vector<1x32xf32> to vector<16x32xf32>
    %198 = arith.addf %196, %197 : vector<16x32xf32>
    %199 = arith.addf %198, %187 : vector<16x32xf32>
    %cst_63 = arith.constant dense<0.000000e+00> : vector<16xf32>
    %200 = vector.multi_reduction <add>, %199, %cst_63 [1] : vector<16x32xf32> to vector<16xf32>
    %201 = vector.shape_cast %200 : vector<16xf32> to vector<16x1xf32>
    %cst_64 = arith.constant 3.200000e+01 : f32
    %202 = vector.broadcast %cst_64 : f32 to vector<16x1xf32>
    %203 = arith.divf %201, %202 : vector<16x1xf32>
    %204 = arith.mulf %199, %199 : vector<16x32xf32>
    %cst_65 = arith.constant dense<0.000000e+00> : vector<16xf32>
    %205 = vector.multi_reduction <add>, %204, %cst_65 [1] : vector<16x32xf32> to vector<16xf32>
    %206 = vector.shape_cast %205 : vector<16xf32> to vector<16x1xf32>
    %cst_66 = arith.constant 3.200000e+01 : f32
    %207 = vector.broadcast %cst_66 : f32 to vector<16x1xf32>
    %208 = arith.divf %206, %207 : vector<16x1xf32>
    %209 = arith.mulf %203, %203 : vector<16x1xf32>
    %210 = arith.subf %208, %209 : vector<16x1xf32>
    %211 = vector.broadcast %203 : vector<16x1xf32> to vector<16x32xf32>
    %212 = arith.subf %199, %211 : vector<16x32xf32>
    %cst_67 = arith.constant 9.99999974E-6 : f32
    %213 = vector.broadcast %cst_67 : f32 to vector<16x1xf32>
    %214 = arith.addf %210, %213 : vector<16x1xf32>
    %215 = math.rsqrt %214 : vector<16x1xf32>
    %216 = vector.broadcast %215 : vector<16x1xf32> to vector<16x32xf32>
    %217 = arith.mulf %212, %216 : vector<16x32xf32>
    %218 = vector.broadcast %9 : vector<1x32xf32> to vector<16x32xf32>
    %219 = arith.mulf %217, %218 : vector<16x32xf32>
    %220 = vector.broadcast %10 : vector<1x32xf32> to vector<16x32xf32>
    %221 = arith.addf %219, %220 : vector<16x32xf32>
    %c0_68 = arith.constant 0 : index
    %c0_69 = arith.constant 0 : index
    %222 = vector.load %arg7[%c0_68, %c0_69] : memref<16x32xf32, #tpu.memory_space<vmem>>, vector<16x32xf32>
    tpu.vector_store %arg7[%c0_68, %c0_69], %221 {strides = array<i32>} : memref<16x32xf32, #tpu.memory_space<vmem>>, vector<16x32xf32>,
    return
  }
}

</mosaic_0001>

<bundles_post_ra>
// kernel: transformer_block.1
= control target key start
LH: loop header
LB: loop body
LE: loop exit
PB: predicated region body
PF: predicated region fallthrough
CT: control target
= control target key end

     0   :  { %vm41_vm0 = vcmask 785408   ;;  %s3231_s0 = inlined_call_operand.vmem [shape: f32[16,96], index: 0, kind: input, shape index: {}]   ;;  %s3232_s1 = inlined_call_operand.vmem [shape: f32[96,96], index: 1, kind: input, shape index: {}]   ;;  %s3233_s2 = inlined_call_operand.vmem [shape: f32[32,32], index: 2, kind: input, shape index: {}]   ;;  %s3234_s3 = inlined_call_operand.vmem [shape: f32[32,128], index: 3, kind: input, shape index: {}]   ;;  %s3235_s4 = inlined_call_operand.vmem [shape: f32[128,32], index: 4, kind: input, shape index: {}]   ;;  %s3236_s5 = inlined_call_operand.vmem [shape: f32[1,128], index: 5, kind: input, shape index: {}]   ;;  %s3237_s6 = inlined_call_operand.vmem [shape: f32[8,32], index: 6, kind: input, shape index: {}]   ;;  %s3238_s7 = inlined_call_operand.hbm [shape: f32[16,32], index: 7, kind: output, shape index: {}]  }
   0x1   :  { %v29_v0 = vld [vmem:[%s3232_s1] sm:$0xff]  ;;  %v30_v1 = vld [vmem:[%s3232_s1 + $0x8] sm:$0xff]  ;;  %v31_v2 = vld [vmem:[%s3232_s1 + $0x10] sm:$0xff] }
   0x2   :  { %v2658_v3 = vpack.c.bf16 %v30_v1, %v29_v0  ;;  %v32_v4 = vld [vmem:[%s3232_s1 + $0x18] sm:$0xff]  ;;  %v33_v6 = vld [vmem:[%s3232_s1 + $0x20] sm:$0xff]  ;;  %v34_v7 = vld [vmem:[%s3232_s1 + $0x28] sm:$0xff] }
   0x3   :  { %v2662_v5 = vpack.c.bf16 %v32_v4, %v31_v2  ;;  %v2879_v8 = vld [vmem:[%s3231_s0] sm:$0xff] }
   0x4   :  { %2659 = vmatprep.subr.bf16.mxu0 %v2658_v3 }
   0x5   :  { %2661 = vmatpush3.bf16.msra.mxu0 %v2658_v3 }
   0x6   :  { %12 = vsyncpa [#allocation3], 0  ;;  %2663 = vmatprep.subr.bf16.mxu0 %v2662_v5  ;;  %v2666_v9 = vpack.c.bf16 %v34_v7, %v33_v6  ;;  %2489 = vmatprep.mubr.msk.f32.mxu0 %vm41_vm0, %v2879_v8  ;;  %v35_v10 = vld [vmem:[%s3232_s1 + $0x30] sm:$0xff]  ;;  %v36_v11 = vld [vmem:[%s3232_s1 + $0x38] sm:$0xff]  ;;  %v2802_v20 = vmov 0.0   ;;  %vm2803_vm1 = vmmov 0  }
   0x7   :  { %v2670_v12 = vpack.c.bf16 %v36_v11, %v35_v10  ;;  %v37_v13 = vld [vmem:[%s3232_s1 + $0x40] sm:$0xff]  ;;  %v38_v14 = vld [vmem:[%s3232_s1 + $0x48] sm:$0xff]  ;;  %v39_v16 = vld [vmem:[%s3232_s1 + $0x50] sm:$0xff]  ;;  %2507 = vmatprep.subr.mxu1 %v2802_v20  ;;  %2509 = vmatprep.mubr.msk.f32.mxu1 %vm2803_vm1, %v2802_v20  ;;  %s2806_s29 = smov 88   ;;  %s2807_s30 = smov 80   ;;  %vm133_vm2 = vcmask 64512  }
   0x8   :  { %v2674_v15 = vpack.c.bf16 %v38_v14, %v37_v13  ;;  %v40_v17 = vld [vmem:[%s3232_s1 + $0x58] sm:$0xff]  ;;  %v2904_v19 = vld [vmem:[%s3231_s0 + $0x8] sm:$0xff]  ;;  %s2804_s0 = smov 96   ;;  %s2805_s1 = smov 64   ;;  %v2980_v0 = vld [vmem:[%s3233_s2] sm:$0xff]  ;;  %vm2047_vm3 = vcmask 261120  }
   0x9   :  { %2665 = vmatpush3.bf16.msra.mxu0 %v2662_v5  ;;  %v2678_v18 = vpack.c.bf16 %v40_v17, %v39_v16  ;;  %s2808_s8 = smov 48   ;;  %s2809_s9 = smov 56   ;;  %v2973_v62 = vld [vmem:[%s3233_s2 + $0x8] sm:$0xff] }
   0xa   :  { %2667 = vmatprep.subr.bf16.mxu0 %v2666_v9  ;;  %s2810_s10 = smov 120   ;;  %s2811_s11 = smov 72  }
   0xb   :  { %s2812_s12 = smov 40   ;;  %s2813_s13 = smov 112  }
   0xc   :  { %s2814_s20 = smov 104  }
   0xd   :  { %2669 = vmatpush3.bf16.msra.mxu0 %v2666_v9  ;;  %v3002_v9 = vld [vmem:[%s3233_s2 + $0x10] sm:$0xff] }
   0xe   :  { %2671 = vmatprep.subr.bf16.mxu0 %v2670_v12 }
  0x11   :  { %2673 = vmatpush3.bf16.msra.mxu0 %v2670_v12 }
  0x12   :  { %2675 = vmatprep.subr.bf16.mxu0 %v2674_v15 }
  0x15   :  { %2677 = vmatpush3.bf16.msra.mxu0 %v2674_v15 }
  0x16   :  { %2679 = vmatprep.subr.bf16.mxu0 %v2678_v18 }
  0x19   :  { %2681 = vmatpush3.bf16.msra.mxu0 %v2678_v18 }
  0x1a   :  { %2492 = vmatprep.subr.mxu0 %v2802_v20 }
  0x1c   :  { %2490 = vmatmul.mubr.msk.f32.vlgmr.msra.gmra.mrb[0].mxu0 %vm41_vm0, %v2904_v19 }
  0x1d   :  { %2494 = vmatprep.mubr.msk.f32.mxu0 %vm2803_vm1, %v2802_v20 }
  0xef   :  { %v2914_v21 = vpop.f32.mrb[0].mxu0 }
  0xf0   :  { %v2916_v22 = vpop.f32.mrb[1].mxu0 }
  0xf1   :  { %131 = vrot.lane.b32.xlu0 %v2916_v22, %s2804_s0 }
  0xf5   :  { %129 = vrot.lane.b32.xlu0 %v2916_v22, %s2805_s1 }
  0xf9   :  { %294 = vrot.lane.b32.xlu0 %v2916_v22, %s2806_s29 }
  0xfd   :  { %605 = vrot.lane.b32.xlu0 %v2916_v22, %s2807_s30 }
 0x101   :  { %603 = vrot.lane.b32.xlu0 %v2916_v22, %s2808_s8 }
 0x163   :  { %v132_v23 = vpop.permute.xlu0 %131 }
 0x164   :  { %2493 = vmatpush3.xpose.msk.msra.mxu0 %vm133_vm2, %v132_v23 }
 0x165   :  { %2497 = vmatprep.subr.mxu0 %v2802_v20 }
 0x167   :  { %v130_v24 = vpop.permute.xlu0 %129 }
 0x168   :  { %2495 = vmatmul.mubr.msk.f32.vlgmr.msra.gmra.mrb[2].mxu0 %vm133_vm2, %v130_v24 }
 0x169   :  { %2498 = vmatpush3.msra.mxu0 %v2916_v22  ;;  %2499 = vmatprep.mubr.msk.f32.mxu0 %vm2803_vm1, %v2802_v20 }
 0x16a   :  { %2502 = vmatprep.subr.mxu0 %v2802_v20 }
 0x16b   :  { %v295_v34 = vpop.permute.xlu0 %294 }
 0x16f   :  { %v606_v37 = vpop.permute.xlu0 %605 }
 0x173   :  { %v604_v39 = vpop.permute.xlu0 %603 }
 0x23b   :  { %v204_v25 = vpop.f32.mrb[2].mxu0 }
 0x23c   :  { %v2496_v26 = vpop.f32.mrb[3].mxu0  ;;  %v208_v27 = vsel %vm133_vm2, %v204_v25, -inf }
 0x23d   :  { %209 = vmax.xlane.f32.xlu1 %v208_v27 }
 0x2ca   :  { %v210_v28 = vpop.xlane.xlu1 %209 }
 0x2cb   :  { %v211_v29 = vsub.f32 %v204_v25, %v210_v28 }
 0x2cd   :  { %v212_v30 = vmul.f32 1.442695, %v211_v29 }
 0x2cf   :  { %2738 = vpow2.f32 %v212_v30 }
 0x2d9   :  { %v2739_v31 = vpop.eup %2738 }
 0x2da   :  { %v214_v32 = vsel %vm133_vm2, %v2739_v31, 0.0 }
 0x2db   :  { %215 = vadd.xlane.f32.xlu1 %v214_v32 }
 0x2ec   :  { %292 = vrot.lane.b32.xlu1 %v2916_v22, %s2809_s9 }
 0x368   :  { %v216_v33 = vpop.xlane.xlu1 %215 }
 0x369   :  { %2740 = vrcp.f32 %v216_v33 }
 0x36c   :  { %v293_v38 = vpop.permute.xlu1 %292 }
 0x373   :  { %v2741_v35 = vpop.eup %2740 }
 0x374   :  { %v218_v36 = vmul.f32 %v2741_v35, %v2739_v31 }
 0x376   :  { %2500 = vmatmul.mubr.msk.f32.vlgmr.msra.gmra.mrb[4].mxu0 %vm133_vm2, %v218_v36 }
 0x377   :  { %2503 = vmatpush3.xpose.msk.msra.mxu0 %vm133_vm2, %v295_v34  ;;  %2504 = vmatprep.mubr.msk.f32.mxu0 %vm2803_vm1, %v2802_v20 }
 0x378   :  { %2522 = vmatprep.subr.mxu0 %v2802_v20 }
 0x37a   :  { %2505 = vmatmul.mubr.msk.f32.vlgmr.msra.gmra.mrb[6].mxu0 %vm133_vm2, %v293_v38 }
 0x37b   :  { %2523 = vmatpush3.xpose.msk.msra.mxu0 %vm133_vm2, %v606_v37  ;;  %2524 = vmatprep.mubr.msk.f32.mxu0 %vm2803_vm1, %v2802_v20 }
 0x37c   :  { %2532 = vmatprep.subr.mxu0 %v2802_v20 }
 0x37e   :  { %2525 = vmatmul.mubr.msk.f32.vlgmr.msra.gmra.mrb[8].mxu0 %vm133_vm2, %v604_v39 }
 0x37f   :  { %2534 = vmatprep.mubr.msk.f32.mxu0 %vm2803_vm1, %v2802_v20  ;;  %2533 = vmatpush3.msra.mxu0 %v3002_v9 }
 0x380   :  { %2542 = vmatprep.subr.mxu0 %v2802_v20 }
 0x449   :  { %v288_v40 = vpop.f32.mrb[4].mxu0 }
 0x44a   :  { %v2501_v41 = vpop.f32.mrb[5].mxu0 }
 0x44d   :  { %v366_v42 = vpop.f32.mrb[6].mxu0 }
 0x44e   :  { %v2506_v43 = vpop.f32.mrb[7].mxu0  ;;  %v370_v44 = vsel %vm133_vm2, %v366_v42, -inf }
 0x44f   :  { %371 = vmax.xlane.f32.xlu0 %v370_v44 }
 0x451   :  { %v677_v45 = vpop.f32.mrb[8].mxu0 }
 0x452   :  { %v2526_v46 = vpop.f32.mrb[9].mxu0  ;;  %v681_v53 = vsel %vm133_vm2, %v677_v45, -inf }
 0x465   :  { %381 = vrot.lane.b32.xlu0 %v2916_v22, %s2810_s10 }
 0x469   :  { %844 = vrot.lane.b32.xlu0 %v2916_v22, %s2811_s11 }
 0x46d   :  { %842 = vrot.lane.b32.xlu0 %v2916_v22, %s2812_s12 }
 0x4dc   :  { %v372_v47 = vpop.xlane.xlu0 %371 }
 0x4dd   :  { %v373_v48 = vsub.f32 %v366_v42, %v372_v47 }
 0x4df   :  { %v374_v49 = vmul.f32 1.442695, %v373_v48 }
 0x4e0   :  { %v382_v50 = vpop.permute.xlu0 %381 }
 0x4e1   :  { %2742 = vpow2.f32 %v374_v49  ;;  %2508 = vmatpush3.msra.mxu1 %v382_v50 }
 0x4e2   :  { %2512 = vmatprep.subr.mxu1 %v2802_v20 }
 0x4e4   :  { %v845_v6 = vpop.permute.xlu0 %844 }
 0x4e8   :  { %v843_v7 = vpop.permute.xlu0 %842 }
 0x4eb   :  { %v2743_v51 = vpop.eup %2742 }
 0x4ec   :  { %v376_v52 = vsel %vm133_vm2, %v2743_v51, 0.0 }
 0x4ed   :  { %377 = vadd.xlane.f32.xlu1 %v376_v52 }
 0x4f1   :  { %682 = vmax.xlane.f32.xlu1 %v681_v53 }
 0x57a   :  { %v378_v54 = vpop.xlane.xlu1 %377 }
 0x57b   :  { %2744 = vrcp.f32 %v378_v54 }
 0x57e   :  { %v683_v55 = vpop.xlane.xlu1 %682 }
 0x57f   :  { %v684_v56 = vsub.f32 %v677_v45, %v683_v55 }
 0x581   :  { %v685_v57 = vmul.f32 1.442695, %v684_v56 }
 0x583   :  { %2746 = vpow2.f32 %v685_v57 }
 0x585   :  { %v2745_v58 = vpop.eup %2744 }
 0x586   :  { %v380_v59 = vmul.f32 %v2745_v58, %v2743_v51 }
 0x588   :  { %2510 = vmatmul.mubr.msk.f32.vlgmr.msra.gmra.mrb[0].mxu1 %vm133_vm2, %v380_v59 }
 0x589   :  { %2514 = vmatprep.mubr.msk.f32.mxu1 %vm2803_vm1, %v2802_v20  ;;  %2513 = vmatpush3.msra.mxu1 %v2973_v62 }
 0x58a   :  { %2517 = vmatprep.subr.mxu1 %v2802_v20 }
 0x58d   :  { %v2747_v60 = vpop.eup %2746 }
 0x58e   :  { %v687_v61 = vsel %vm133_vm2, %v2747_v60, 0.0 }
 0x58f   :  { %688 = vadd.xlane.f32.xlu1 %v687_v61 }
 0x5a0   :  { %692 = vrot.lane.b32.xlu1 %v2916_v22, %s2813_s13 }
 0x5a4   :  { %1084 = vrot.lane.b32.xlu1 %v2914_v21, %s2804_s0 }
 0x61c   :  { %v689_v63 = vpop.xlane.xlu1 %688 }
 0x61d   :  { %2748 = vrcp.f32 %v689_v63 }
 0x620   :  { %v693_v4 = vpop.permute.xlu1 %692 }
 0x624   :  { %v1085_v33 = vpop.permute.xlu1 %1084 }
 0x627   :  { %v2749_v3 = vpop.eup %2748 }
 0x628   :  { %v691_v5 = vmul.f32 %v2749_v3, %v2747_v60 }
 0x65b   :  { %v453_v1 = vpop.f32.mrb[0].mxu1 }
 0x65c   :  { %v2511_v2 = vpop.f32.mrb[1].mxu1  ;;  %2515 = vmatmul.mubr.msk.f32.vlgmr.msra.gmra.mrb[2].mxu1 %vm133_vm2, %v453_v1 }
 0x65d   :  { %2518 = vmatpush3.msra.mxu1 %v2980_v0  ;;  %2519 = vmatprep.mubr.msk.f32.mxu1 %vm2803_vm1, %v2802_v20 }
 0x65e   :  { %2527 = vmatprep.subr.mxu1 %v2802_v20 }
 0x660   :  { %2520 = vmatmul.mubr.msk.f32.vlgmr.msra.gmra.mrb[4].mxu1 %vm133_vm2, %v288_v40 }
 0x661   :  { %2528 = vmatpush3.msra.mxu1 %v693_v4  ;;  %2529 = vmatprep.mubr.msk.f32.mxu1 %vm2803_vm1, %v2802_v20 }
 0x662   :  { %2537 = vmatprep.subr.mxu1 %v2802_v20 }
 0x664   :  { %2530 = vmatmul.mubr.msk.f32.vlgmr.msra.gmra.mrb[6].mxu1 %vm133_vm2, %v691_v5 }
 0x665   :  { %2539 = vmatprep.mubr.msk.f32.mxu1 %vm2803_vm1, %v2802_v20 }
 0x668   :  { %2538 = vmatpush3.xpose.msk.msra.mxu1 %vm133_vm2, %v845_v6 }
 0x669   :  { %2547 = vmatprep.subr.mxu1 %v2802_v20 }
 0x66b   :  { %2540 = vmatmul.mubr.msk.f32.vlgmr.msra.gmra.mrb[8].mxu1 %vm133_vm2, %v843_v7 }
 0x66c   :  { %2549 = vmatprep.mubr.msk.f32.mxu1 %vm2803_vm1, %v2802_v20 }
 0x72f   :  { %v526_v10 = vpop.f32.mrb[2].mxu1 }
 0x730   :  { %v2516_v11 = vpop.f32.mrb[3].mxu1 }
 0x733   :  { %v599_v12 = vpop.f32.mrb[4].mxu1 }
 0x734   :  { %v600_v13 = vadd.f32 %v599_v12, %v526_v10  ;;  %v2521_v14 = vpop.f32.mrb[5].mxu1 }
 0x737   :  { %v764_v15 = vpop.f32.mrb[6].mxu1 }
 0x738   :  { %v2531_v16 = vpop.f32.mrb[7].mxu1  ;;  %2535 = vmatmul.mubr.msk.f32.vlgmr.msra.gmra.mrb[10].mxu0 %vm133_vm2, %v764_v15 }
 0x739   :  { %2544 = vmatprep.mubr.msk.f32.mxu0 %vm2803_vm1, %v2802_v20 }
 0x73e   :  { %v916_v17 = vpop.f32.mrb[8].mxu1 }
 0x73f   :  { %v2541_v18 = vpop.f32.mrb[9].mxu1  ;;  %v920_v23 = vsel %vm133_vm2, %v916_v17, -inf }
 0x740   :  { %921 = vmax.xlane.f32.xlu0 %v920_v23 }
 0x756   :  { %931 = vrot.lane.b32.xlu0 %v2916_v22, %s2814_s20  ;;  %v3023_v22 = vld [vmem:[%s3233_s2 + $0x18] sm:$0xff] }
 0x757   :  { %2548 = vmatpush3.msra.mxu1 %v3023_v22 }
 0x758   :  { %2557 = vmatprep.subr.mxu1 %v2802_v20 }
 0x75a   :  { %1082 = vrot.lane.b32.xlu0 %v2914_v21, %s2805_s1 }
 0x75e   :  { %1246 = vrot.lane.b32.xlu0 %v2914_v21, %s2806_s29 }
 0x7cd   :  { %v922_v24 = vpop.xlane.xlu0 %921 }
 0x7ce   :  { %v923_v25 = vsub.f32 %v916_v17, %v922_v24 }
 0x7d0   :  { %v924_v26 = vmul.f32 1.442695, %v923_v25 }
 0x7d1   :  { %v932_v27 = vpop.permute.xlu0 %931 }
 0x7d2   :  { %2750 = vpow2.f32 %v924_v26  ;;  %2543 = vmatpush3.msra.mxu0 %v932_v27 }
 0x7d3   :  { %2552 = vmatprep.subr.mxu0 %v2802_v20 }
 0x7d5   :  { %v1083_v36 = vpop.permute.xlu0 %1082 }
 0x7d9   :  { %v1247_v38 = vpop.permute.xlu0 %1246 }
 0x7dc   :  { %v2751_v28 = vpop.eup %2750 }
 0x7dd   :  { %v926_v29 = vsel %vm133_vm2, %v2751_v28, 0.0 }
 0x7de   :  { %927 = vadd.xlane.f32.xlu1 %v926_v29 }
 0x7ef   :  { %1244 = vrot.lane.b32.xlu1 %v2914_v21, %s2809_s9 }
 0x80b   :  { %v837_v30 = vpop.f32.mrb[10].mxu0 }
 0x80c   :  { %v841_v31 = vadd.f32 %v837_v30, %v600_v13  ;;  %v2536_v32 = vpop.f32.mrb[11].mxu0 }
 0x86b   :  { %v928_v34 = vpop.xlane.xlu1 %927 }
 0x86c   :  { %2752 = vrcp.f32 %v928_v34 }
 0x86f   :  { %v1245_v39 = vpop.permute.xlu1 %1244 }
 0x876   :  { %v2753_v35 = vpop.eup %2752 }
 0x877   :  { %v930_v37 = vmul.f32 %v2753_v35, %v2751_v28 }
 0x879   :  { %2545 = vmatmul.mubr.msk.f32.vlgmr.msra.gmra.mrb[12].mxu0 %vm133_vm2, %v930_v37 }
 0x87a   :  { %2553 = vmatpush3.xpose.msk.msra.mxu0 %vm133_vm2, %v1085_v33  ;;  %2554 = vmatprep.mubr.msk.f32.mxu0 %vm2803_vm1, %v2802_v20 }
 0x87b   :  { %2562 = vmatprep.subr.mxu0 %v2802_v20 }
 0x87d   :  { %2555 = vmatmul.mubr.msk.f32.vlgmr.msra.gmra.mrb[14].mxu0 %vm133_vm2, %v1083_v36 }
 0x87e   :  { %2563 = vmatpush3.xpose.msk.msra.mxu0 %vm133_vm2, %v1247_v38  ;;  %2564 = vmatprep.mubr.msk.f32.mxu0 %vm2803_vm1, %v2802_v20 }
 0x87f   :  { %2572 = vmatprep.subr.mxu0 %v2802_v20 }
 0x881   :  { %2565 = vmatmul.mubr.msk.f32.vlgmr.msra.gmra.mrb[16].mxu0 %vm133_vm2, %v1245_v39 }
 0x882   :  { %2573 = vmatpush3.msra.mxu0 %v2973_v62  ;;  %2574 = vmatprep.mubr.msk.f32.mxu0 %vm2803_vm1, %v2802_v20 }
 0x883   :  { %2582 = vmatprep.subr.mxu0 %v2802_v20 }
 0x94c   :  { %v1003_v40 = vpop.f32.mrb[12].mxu0 }
 0x94d   :  { %v2546_v41 = vpop.f32.mrb[13].mxu0  ;;  %2550 = vmatmul.mubr.msk.f32.vlgmr.msra.gmra.mrb[10].mxu1 %vm133_vm2, %v1003_v40 }
 0x94e   :  { %2558 = vmatpush3.msra.mxu1 %v2914_v21  ;;  %2559 = vmatprep.mubr.msk.f32.mxu1 %vm2803_vm1, %v2802_v20 }
 0x94f   :  { %2567 = vmatprep.subr.mxu1 %v2802_v20 }
 0x950   :  { %v1156_v42 = vpop.f32.mrb[14].mxu0 }
 0x951   :  { %v2556_v43 = vpop.f32.mrb[15].mxu0  ;;  %v1160_v44 = vsel %vm133_vm2, %v1156_v42, -inf }
 0x952   :  { %1161 = vmax.xlane.f32.xlu0 %v1160_v44 }
 0x954   :  { %v1318_v45 = vpop.f32.mrb[16].mxu0 }
 0x955   :  { %v2566_v46 = vpop.f32.mrb[17].mxu0  ;;  %v1322_v47 = vsel %vm133_vm2, %v1318_v45, -inf }
 0x956   :  { %1323 = vmax.xlane.f32.xlu1 %v1322_v47  ;;  %v3116_v47 = vld [vmem:[%s3237_s6] sm:$0xff] }
 0x967   :  { %1333 = vrot.lane.b32.xlu1 %v2914_v21, %s2810_s10 }
 0x96b   :  { %1555 = vrot.lane.b32.xlu1 %v2914_v21, %s2808_s8 }
 0x9df   :  { %v1162_v48 = vpop.xlane.xlu0 %1161 }
 0x9e0   :  { %v1163_v49 = vsub.f32 %v1156_v42, %v1162_v48 }
 0x9e2   :  { %v1164_v50 = vmul.f32 1.442695, %v1163_v49 }
 0x9e3   :  { %v1324_v51 = vpop.xlane.xlu1 %1323 }
 0x9e4   :  { %2754 = vpow2.f32 %v1164_v50  ;;  %v1325_v52 = vsub.f32 %v1318_v45, %v1324_v51 }
 0x9e6   :  { %v1326_v53 = vmul.f32 1.442695, %v1325_v52 }
 0x9e7   :  { %v1334_v2 = vpop.permute.xlu1 %1333 }
 0x9e8   :  { %2756 = vpow2.f32 %v1326_v53 }
 0x9ee   :  { %v2755_v54 = vpop.eup %2754 }
 0x9ef   :  { %v1166_v55 = vsel %vm133_vm2, %v2755_v54, 0.0 }
 0x9f0   :  { %1167 = vadd.xlane.f32.xlu0 %v1166_v55 }
 0x9f2   :  { %v2757_v56 = vpop.eup %2756 }
 0x9f3   :  { %v1328_v57 = vsel %vm133_vm2, %v2757_v56, 0.0 }
 0x9f4   :  { %1329 = vadd.xlane.f32.xlu0 %v1328_v57 }
 0xa0a   :  { %1557 = vrot.lane.b32.xlu0 %v2914_v21, %s2807_s30 }
 0xa20   :  { %v1076_v58 = vpop.f32.mrb[10].mxu1 }
 0xa21   :  { %v3057_v59 = vadd.f32 %v1076_v58, %v841_v31  ;;  %v2551_v60 = vpop.f32.mrb[11].mxu1 }
 0xa7d   :  { %v1168_v61 = vpop.xlane.xlu0 %1167 }
 0xa7e   :  { %2758 = vrcp.f32 %v1168_v61 }
 0xa81   :  { %v1330_v62 = vpop.xlane.xlu0 %1329 }
 0xa82   :  { %2760 = vrcp.f32 %v1330_v62 }
 0xa85   :  { %v1558_v10 = vpop.permute.xlu0 %1557 }
 0xa88   :  { %v2759_v63 = vpop.eup %2758 }
 0xa89   :  { %v1170_v1 = vmul.f32 %v2759_v63, %v2755_v54 }
 0xa8b   :  { %2560 = vmatmul.mubr.msk.f32.vlgmr.msra.gmra.mrb[12].mxu1 %vm133_vm2, %v1170_v1 }
 0xa8c   :  { %v2761_v3 = vpop.eup %2760  ;;  %2568 = vmatpush3.msra.mxu1 %v1334_v2  ;;  %2569 = vmatprep.mubr.msk.f32.mxu1 %vm2803_vm1, %v2802_v20 }
 0xa8d   :  { %v1332_v4 = vmul.f32 %v2761_v3, %v2757_v56  ;;  %2577 = vmatprep.subr.mxu1 %v2802_v20 }
 0xa8f   :  { %2570 = vmatmul.mubr.msk.f32.vlgmr.msra.gmra.mrb[14].mxu1 %vm133_vm2, %v1332_v4 }
 0xa90   :  { %2578 = vmatpush3.msra.mxu1 %v2980_v0  ;;  %2579 = vmatprep.mubr.msk.f32.mxu1 %vm2803_vm1, %v2802_v20  ;;  %v1556_v0 = vpop.permute.xlu1 %1555 }
 0xa91   :  { %2587 = vmatprep.subr.mxu1 %v2802_v20 }
 0xb5e   :  { %v1240_v5 = vpop.f32.mrb[12].mxu1 }
 0xb5f   :  { %v2561_v6 = vpop.f32.mrb[13].mxu1  ;;  %2580 = vmatmul.mubr.msk.f32.vlgmr.msra.gmra.mrb[16].mxu1 %vm133_vm2, %v1240_v5  ;;  %v2091_v5 = vld [vmem:[%s3234_s3] sm:$0xff] }
 0xb60   :  { %2589 = vmatprep.mubr.msk.f32.mxu1 %vm2803_vm1, %v2802_v20  ;;  %v2092_v6 = vld [vmem:[%s3234_s3 + $0x8] sm:$0xff] }
 0xb62   :  { %v1405_v7 = vpop.f32.mrb[14].mxu1 }
 0xb63   :  { %v2571_v11 = vpop.f32.mrb[15].mxu1  ;;  %2575 = vmatmul.mubr.msk.f32.vlgmr.msra.gmra.mrb[18].mxu0 %vm133_vm2, %v1405_v7  ;;  %v2682_v7 = vpack.c.bf16 %v2092_v6, %v2091_v5 }
 0xb64   :  { %2583 = vmatpush3.xpose.msk.msra.mxu0 %vm133_vm2, %v1558_v10  ;;  %2584 = vmatprep.mubr.msk.f32.mxu0 %vm2803_vm1, %v2802_v20  ;;  %v2093_v10 = vld [vmem:[%s3234_s3 + $0x10] sm:$0xff]  ;;  %v2094_v11 = vld [vmem:[%s3234_s3 + $0x18] sm:$0xff] }
 0xb65   :  { %2592 = vmatprep.subr.mxu0 %v2802_v20 }
 0xb67   :  { %2585 = vmatmul.mubr.msk.f32.vlgmr.msra.gmra.mrb[20].mxu0 %vm133_vm2, %v1556_v0  ;;  %v2686_v0 = vpack.c.bf16 %v2094_v11, %v2093_v10 }
 0xb68   :  { %2593 = vmatpush3.msra.mxu0 %v3002_v9  ;;  %2594 = vmatprep.mubr.msk.f32.mxu0 %vm2803_vm1, %v2802_v20 }
 0xb69   :  { %2602 = vmatprep.subr.mxu0 %v2802_v20 }
 0xc32   :  { %v1551_v12 = vpop.f32.mrb[16].mxu1 }
 0xc33   :  { %v2581_v13 = vpop.f32.mrb[17].mxu1 }
 0xc34   :  { %v2186_v13 = vld [vmem:[%s3235_s4 + $0x8] sm:$0xff] }
 0xc36   :  { %v1478_v14 = vpop.f32.mrb[18].mxu0 }
 0xc37   :  { %v1552_v15 = vadd.f32 %v1551_v12, %v1478_v14  ;;  %v2576_v16 = vpop.f32.mrb[19].mxu0  ;;  %v2185_v12 = vld [vmem:[%s3235_s4] sm:$0xff]  ;;  %v2187_v14 = vld [vmem:[%s3235_s4 + $0x10] sm:$0xff] }
 0xc38   :  { %v2188_v16 = vld [vmem:[%s3235_s4 + $0x18] sm:$0xff] }
 0xc3a   :  { %v1629_v17 = vpop.f32.mrb[20].mxu0 }
 0xc3b   :  { %v2586_v18 = vpop.f32.mrb[21].mxu0  ;;  %v1633_v23 = vsel %vm133_vm2, %v1629_v17, -inf }
 0xc3c   :  { %1634 = vmax.xlane.f32.xlu1 %v1633_v23  ;;  %v2189_v18 = vld [vmem:[%s3235_s4 + $0x20] sm:$0xff]  ;;  %v2190_v23 = vld [vmem:[%s3235_s4 + $0x28] sm:$0xff] }
 0xc4d   :  { %1796 = vrot.lane.b32.xlu1 %v2914_v21, %s2811_s11 }
 0xc51   :  { %1794 = vrot.lane.b32.xlu1 %v2914_v21, %s2812_s12 }
 0xcc9   :  { %v1635_v9 = vpop.xlane.xlu1 %1634 }
 0xcca   :  { %v1636_v24 = vsub.f32 %v1629_v17, %v1635_v9  ;;  %v2694_v17 = vpack.c.bf16 %v2188_v16, %v2187_v14  ;;  %v2698_v9 = vpack.c.bf16 %v2190_v23, %v2189_v18 }
 0xccc   :  { %v1637_v25 = vmul.f32 1.442695, %v1636_v24  ;;  %v2191_v24 = vld [vmem:[%s3235_s4 + $0x30] sm:$0xff] }
 0xccd   :  { %v1797_v31 = vpop.permute.xlu1 %1796 }
 0xcce   :  { %2762 = vpow2.f32 %v1637_v25  ;;  %v2192_v25 = vld [vmem:[%s3235_s4 + $0x38] sm:$0xff] }
 0xcd1   :  { %v1795_v33 = vpop.permute.xlu1 %1794 }
 0xcd8   :  { %v2763_v26 = vpop.eup %2762 }
 0xcd9   :  { %v1639_v27 = vsel %vm133_vm2, %v2763_v26, 0.0 }
 0xcda   :  { %1640 = vadd.xlane.f32.xlu0 %v1639_v27  ;;  %v2193_v27 = vld [vmem:[%s3235_s4 + $0x40] sm:$0xff] }
 0xcf0   :  { %1644 = vrot.lane.b32.xlu0 %v2914_v21, %s2813_s13 }
 0xd67   :  { %v1641_v28 = vpop.xlane.xlu0 %1640 }
 0xd68   :  { %2764 = vrcp.f32 %v1641_v28  ;;  %v2194_v28 = vld [vmem:[%s3235_s4 + $0x48] sm:$0xff] }
 0xd6b   :  { %v1645_v29 = vpop.permute.xlu0 %1644 }
 0xd6c   :  { %2588 = vmatpush3.msra.mxu1 %v1645_v29  ;;  %v2706_v29 = vpack.c.bf16 %v2194_v28, %v2193_v27 }
 0xd6d   :  { %2597 = vmatprep.subr.mxu1 %v2802_v20 }
 0xd72   :  { %v2765_v30 = vpop.eup %2764 }
 0xd73   :  { %v1643_v32 = vmul.f32 %v2765_v30, %v2763_v26  ;;  %v2702_v26 = vpack.c.bf16 %v2192_v25, %v2191_v24  ;;  %v2195_v30 = vld [vmem:[%s3235_s4 + $0x50] sm:$0xff] }
 0xd75   :  { %2590 = vmatmul.mubr.msk.f32.vlgmr.msra.gmra.mrb[18].mxu1 %vm133_vm2, %v1643_v32 }
 0xd76   :  { %2598 = vmatpush3.xpose.msk.msra.mxu1 %vm133_vm2, %v1797_v31  ;;  %2599 = vmatprep.mubr.msk.f32.mxu1 %vm2803_vm1, %v2802_v20  ;;  %v2196_v31 = vld [vmem:[%s3235_s4 + $0x58] sm:$0xff] }
 0xd77   :  { %2607 = vmatprep.subr.mxu1 %v2802_v20  ;;  %v2710_v32 = vpack.c.bf16 %v2196_v31, %v2195_v30 }
 0xd79   :  { %2600 = vmatmul.mubr.msk.f32.vlgmr.msra.gmra.mrb[20].mxu1 %vm133_vm2, %v1795_v33  ;;  %v2197_v33 = vld [vmem:[%s3235_s4 + $0x60] sm:$0xff] }
 0xd7a   :  { %2608 = vmatpush3.msra.mxu1 %v3023_v22  ;;  %2609 = vmatprep.mubr.msk.f32.mxu1 %vm2803_vm1, %v2802_v20 }
 0xe48   :  { %v1716_v34 = vpop.f32.mrb[18].mxu1 }
 0xe49   :  { %v2591_v35 = vpop.f32.mrb[19].mxu1  ;;  %2595 = vmatmul.mubr.msk.f32.vlgmr.msra.gmra.mrb[22].mxu0 %vm133_vm2, %v1716_v34  ;;  %v2198_v34 = vld [vmem:[%s3235_s4 + $0x68] sm:$0xff] }
 0xe4a   :  { %2604 = vmatprep.mubr.msk.f32.mxu0 %vm2803_vm1, %v2802_v20  ;;  %v2714_v35 = vpack.c.bf16 %v2198_v34, %v2197_v33 }
 0xe4c   :  { %v1868_v36 = vpop.f32.mrb[20].mxu1 }
 0xe4d   :  { %v2601_v37 = vpop.f32.mrb[21].mxu1  ;;  %v1872_v38 = vsel %vm133_vm2, %v1868_v36, -inf }
 0xe4e   :  { %1873 = vmax.xlane.f32.xlu0 %v1872_v38 }
 0xe64   :  { %1883 = vrot.lane.b32.xlu0 %v2914_v21, %s2814_s20  ;;  %v2033_v21 = vlaneseq }
 0xe66   :  { %v3110_v46 = vshrl.u32 %v2033_v21, 7 }
 0xe68   :  { %2041 = vrot.lane.b32.xlu0 %v2904_v19, %s2805_s1  ;;  %v2035_v19 = vsub.s32 0, %v3110_v46  ;;  %v2203_v10 = vsub.s32 3, %v3110_v46 }
 0xe6a   :  { %v2036_v48 = vrot.slane %v3116_v47, %v2035_v19  ;;  %v2204_v11 = vrot.slane %v3116_v47, %v2203_v10 }
 0xe6c   :  { %v2037_v50 = vadd.f32 %v2036_v48, %v3057_v59 }
 0xedb   :  { %v1874_v22 = vpop.xlane.xlu0 %1873 }
 0xedc   :  { %v1875_v39 = vsub.f32 %v1868_v36, %v1874_v22 }
 0xede   :  { %v1876_v40 = vmul.f32 1.442695, %v1875_v39 }
 0xedf   :  { %v1884_v41 = vpop.permute.xlu0 %1883 }
 0xee0   :  { %2766 = vpow2.f32 %v1876_v40  ;;  %2603 = vmatpush3.msra.mxu0 %v1884_v41 }
 0xee1   :  { %2683 = vmatprep.subr.bf16.mxu0 %v2682_v7 }
 0xee3   :  { %v2042_v59 = vpop.permute.xlu0 %2041 }
 0xeea   :  { %v2767_v42 = vpop.eup %2766 }
 0xeeb   :  { %v1878_v20 = vsel %vm133_vm2, %v2767_v42, 0.0 }
 0xeec   :  { %1879 = vadd.xlane.f32.xlu1 %v1878_v20 }
 0xefd   :  { %2039 = vrot.lane.b32.xlu1 %v2879_v8, %s2805_s1 }
 0xf1c   :  { %v1789_v43 = vpop.f32.mrb[22].mxu0 }
 0xf1d   :  { %v1793_v44 = vadd.f32 %v1789_v43, %v1552_v15  ;;  %v2596_v45 = vpop.f32.mrb[23].mxu0  ;;  %v2690_v15 = vpack.c.bf16 %v2186_v13, %v2185_v12 }
 0xf1f   :  { %2691 = vmatprep.subr.bf16.mxu1 %v2690_v15 }
 0xf79   :  { %v1880_v49 = vpop.xlane.xlu1 %1879 }
 0xf7a   :  { %2768 = vrcp.f32 %v1880_v49 }
 0xf7d   :  { %v2040_v8 = vpop.permute.xlu1 %2039 }
 0xf7e   :  { %v3120_v51 = vadd.f32 %v2040_v8, %v2037_v50 }
 0xf80   :  { %v2048_v52 = vsel %vm2047_vm3, %v3120_v51, 0.0  ;;  %v2057_v2 = vmul.f32 %v3120_v51, %v3120_v51 }
 0xf81   :  { %2049 = vadd.xlane.f32.xlu1 %v2048_v52  ;;  %v2087_v52 = vsub.s32 2, %v3110_v46 }
 0xf82   :  { %v2059_v4 = vsel %vm2047_vm3, %v2057_v2, 0.0 }
 0xf84   :  { %v2769_v53 = vpop.eup %2768 }
 0xf85   :  { %v1882_v54 = vmul.f32 %v2769_v53, %v2767_v42 }
 0xf87   :  { %2605 = vmatmul.mubr.msk.f32.vlgmr.msra.gmra.mrb[24].mxu0 %vm133_vm2, %v1882_v54 }
 0xf88   :  { %2685 = vmatpush3.bf16.msra.mxu0 %v2682_v7 }
 0xf89   :  { %2687 = vmatprep.subr.bf16.mxu0 %v2686_v0 }
 0xf8c   :  { %2689 = vmatpush3.bf16.msra.mxu0 %v2686_v0 }
0x100e   :  { %v2050_v36 = vpop.xlane.xlu1 %2049 }
0x100f   :  { %v2055_v38 = vmul.f32 0.03125, %v2050_v36 }
0x1011   :  { %v2067_v20 = vmul.f32 %v2055_v38, %v2055_v38  ;;  %v2071_v53 = vsub.f32 %v3120_v51, %v2055_v38  ;;  %v2200_v51 = vld [vmem:[%s3235_s4 + $0x78] sm:$0xff] }
0x105a   :  { %v1955_v55 = vpop.f32.mrb[24].mxu0 }
0x105b   :  { %v2606_v56 = vpop.f32.mrb[25].mxu0  ;;  %2610 = vmatmul.mubr.msk.f32.vlgmr.msra.gmra.mrb[22].mxu1 %vm133_vm2, %v1955_v55 }
0x105c   :  { %2693 = vmatpush3.bf16.msra.mxu1 %v2690_v15 }
0x105d   :  { %2695 = vmatprep.subr.bf16.mxu1 %v2694_v17 }
0x1060   :  { %2697 = vmatpush3.bf16.msra.mxu1 %v2694_v17 }
0x1061   :  { %2699 = vmatprep.subr.bf16.mxu1 %v2698_v9 }
0x1064   :  { %2701 = vmatpush3.bf16.msra.mxu1 %v2698_v9 }
0x1065   :  { %2703 = vmatprep.subr.bf16.mxu1 %v2702_v26 }
0x1068   :  { %2705 = vmatpush3.bf16.msra.mxu1 %v2702_v26 }
0x1069   :  { %2707 = vmatprep.subr.bf16.mxu1 %v2706_v29 }
0x106c   :  { %2709 = vmatpush3.bf16.msra.mxu1 %v2706_v29 }
0x106d   :  { %2711 = vmatprep.subr.bf16.mxu1 %v2710_v32 }
0x1070   :  { %2713 = vmatpush3.bf16.msra.mxu1 %v2710_v32 }
0x1071   :  { %2715 = vmatprep.subr.bf16.mxu1 %v2714_v35 }
0x1074   :  { %2717 = vmatpush3.bf16.msra.mxu1 %v2714_v35 }
0x112e   :  { %v2028_v57 = vpop.f32.mrb[22].mxu1 }
0x112f   :  { %v2032_v58 = vadd.f32 %v2028_v57, %v1793_v44  ;;  %v2611_v60 = vpop.f32.mrb[23].mxu1 }
0x1131   :  { %v2038_v61 = vadd.f32 %v2036_v48, %v2032_v58  ;;  %v2081_v48 = vsub.s32 1, %v3110_v46  ;;  %v2088_v58 = vrot.slane %v3116_v47, %v2087_v52 }
0x1133   :  { %v3126_v62 = vadd.f32 %v2042_v59, %v2038_v61  ;;  %v2082_v8 = vrot.slane %v3116_v47, %v2081_v48 }
0x1135   :  { %v2051_v63 = vsel %vm2047_vm3, %v3126_v62, 0.0  ;;  %v2058_v1 = vmul.f32 %v3126_v62, %v3126_v62 }
0x1136   :  { %2052 = vadd.xlane.f32.xlu0 %v2051_v63 }
0x1137   :  { %v2062_v3 = vsel %vm2047_vm3, %v2058_v1, 0.0  ;;  %v2376_v1 = vld [vmem:[%s3236_s5] ss:$0 sm:$0xff] }
0x1138   :  { %2063 = vadd.xlane.f32.xlu1 %v2062_v3 }
0x113a   :  { %2060 = vadd.xlane.f32.xlu0 %v2059_v4 }
0x11c3   :  { %v2053_v37 = vpop.xlane.xlu0 %2052 }
0x11c4   :  { %v2056_v22 = vmul.f32 0.03125, %v2053_v37 }
0x11c5   :  { %v2064_v39 = vpop.xlane.xlu1 %2063 }
0x11c6   :  { %v2068_v40 = vmul.f32 %v2056_v22, %v2056_v22  ;;  %v2066_v41 = vmul.f32 0.03125, %v2064_v39  ;;  %v2072_v49 = vsub.f32 %v3126_v62, %v2056_v22  ;;  %v2199_v62 = vld [vmem:[%s3235_s4 + $0x70] sm:$0xff]  ;;  %v2314_v39 = vsub.s32 4, %v3110_v46  ;;  %s2815_s4 = smov [#allocation2]  }
0x11c7   :  { %v2061_v42 = vpop.xlane.xlu0 %2060  ;;  %v2718_v63 = vpack.c.bf16 %v2200_v51, %v2199_v62  ;;  %s2331_s5 = sshll.u32 %s2815_s4, 4  ;;  %s2332_s5 = int_to_ptr.vmem [resolvable:$true] %s2331_s5 }
0x11c8   :  { %v2070_v43 = vsub.f32 %v2066_v41, %v2068_v40  ;;  %v2065_v44 = vmul.f32 0.03125, %v2061_v42  ;;  %v2320_v40 = vsub.s32 5, %v3110_v46  ;;  %v2315_v42 = vrot.slane %v3116_v47, %v2314_v39  ;;  %s2778_s12 = scalar_lea.vmem %s2332_s5, 256  ;;  %p2783_p1 = scmp.lt.s32.totalorder %s2332_s5, %s2332_s5 }
0x11c9   :  { %2719 = vmatprep.subr.bf16.mxu1 %v2718_v63  ;;  %p2779_p0 = scmp.ne.s32.totalorder %s2332_s5, %s2778_s12  ;;  %p2784_p2 = scmp.lt.s32.totalorder %s2778_s12, %s2778_s12 }
0x11ca   :  { %v2074_v45 = vadd.f32 1e-05, %v2070_v43  ;;  %v2069_v21 = vsub.f32 %v2065_v44, %v2067_v20  ;;  %2721 = vmatpush3.bf16.msra.mxu1 %v2718_v63 }
0x11cb   :  { %p2785_p3 = por %p2784_p2, %p2783_p1 }
0x11cc   :  { %2770 = vrsqrt.f32 %v2074_v45  ;;  %v2073_v19 = vadd.f32 1e-05, %v2069_v21  ;;  %v2321_v21 = vrot.slane %v3116_v47, %v2320_v40 }
0x11cd   :  { %p2786_p4 = pnand %p2785_p3, %p2779_p0 }
0x11ce   :  { %2772 = vrsqrt.f32 %v2073_v19 }
0x11d6   :  { %v2771_v50 = vpop.eup %2770 }
0x11d7   :  { %v2078_v54 = vmul.f32 %v2771_v50, %v2072_v49 }
0x11d8   :  { %v2773_v55 = vpop.eup %2772 }
0x11d9   :  { %v2077_v56 = vmul.f32 %v2773_v55, %v2071_v53  ;;  %v2084_v57 = vmul.f32 %v2082_v8, %v2078_v54 }
0x11db   :  { %v2083_v60 = vmul.f32 %v2082_v8, %v2077_v56  ;;  %v2090_v61 = vadd.f32 %v2088_v58, %v2084_v57 }
0x11dd   :  { %v2089_v59 = vadd.f32 %v2088_v58, %v2083_v60 }
0x11df   :  { %2620 = vmatprep.mubr.msk.f32.mxu0 %vm2047_vm3, %v2089_v59 }
0x11e0   :  { %2621 = vmatmul.mubr.msk.f32.vlgmr.msra.gmra.mrb[26].mxu0 %vm2047_vm3, %v2090_v61 }
0x12b3   :  { %v2622_v2 = vpop.f32.mrb[26].mxu0 }
0x12b4   :  { %v2180_v3 = vadd.f32 %v2622_v2, %v2376_v1  ;;  %v2174_v4 = vpop.f32.mrb[27].mxu0 }
0x12b5   :  { %v2175_v5 = vadd.f32 %v2376_v1, %v2174_v4 }
0x12b6   :  { %v2184_v7 = vmax.f32 %v2180_v3, 0.0 }
0x12b7   :  { %v2183_v6 = vmax.f32 %v2175_v5, 0.0 }
0x12b9   :  { %2655 = vmatprep.mubr.f32.mxu1 %v2183_v6 }
0x12ba   :  { %2656 = vmatmul.mubr.f32.vlgmr.msra.gmra.mrb[24].mxu1 %v2184_v7 }
0x138d   :  { %v2657_v0 = vpop.f32.mrb[24].mxu1 }
0x138e   :  { %v2277_v12 = vadd.f32 %v2657_v0, %v2204_v11  ;;  %v2271_v13 = vpop.f32.mrb[25].mxu1 }
0x138f   :  { %v2272_v14 = vadd.f32 %v2271_v13, %v2204_v11 }
0x1390   :  { %v2281_v15 = vadd.f32 %v2277_v12, %v2090_v61 }
0x1391   :  { %v2280_v16 = vadd.f32 %v2272_v14, %v2089_v59 }
0x1392   :  { %v2285_v17 = vsel %vm2047_vm3, %v2281_v15, 0.0  ;;  %v2291_v18 = vmul.f32 %v2281_v15, %v2281_v15 }
0x1393   :  { %2286 = vadd.xlane.f32.xlu1 %v2285_v17  ;;  %v2282_v23 = vsel %vm2047_vm3, %v2280_v16, 0.0  ;;  %v2290_v9 = vmul.f32 %v2280_v16, %v2280_v16 }
0x1394   :  { %2283 = vadd.xlane.f32.xlu0 %v2282_v23  ;;  %v2295_v24 = vsel %vm2047_vm3, %v2291_v18, 0.0 }
0x1395   :  { %v2292_v25 = vsel %vm2047_vm3, %v2290_v9, 0.0 }
0x1397   :  { %2296 = vadd.xlane.f32.xlu1 %v2295_v24 }
0x1398   :  { %2293 = vadd.xlane.f32.xlu0 %v2292_v25 }
0x1420   :  { %v2287_v26 = vpop.xlane.xlu1 %2286 }
0x1421   :  { %v2289_v27 = vmul.f32 0.03125, %v2287_v26  ;;  %v2284_v28 = vpop.xlane.xlu0 %2283 }
0x1422   :  { %v2288_v29 = vmul.f32 0.03125, %v2284_v28 }
0x1423   :  { %v2301_v31 = vmul.f32 %v2289_v27, %v2289_v27  ;;  %v2305_v41 = vsub.f32 %v2281_v15, %v2289_v27 }
0x1424   :  { %v2297_v30 = vpop.xlane.xlu1 %2296  ;;  %v2300_v34 = vmul.f32 %v2288_v29, %v2288_v29  ;;  %v2304_v43 = vsub.f32 %v2280_v16, %v2288_v29 }
0x1425   :  { %v2299_v32 = vmul.f32 0.03125, %v2297_v30  ;;  %v2294_v33 = vpop.xlane.xlu0 %2293 }
0x1426   :  { %v2298_v35 = vmul.f32 0.03125, %v2294_v33 }
0x1427   :  { %v2303_v36 = vsub.f32 %v2299_v32, %v2301_v31 }
0x1428   :  { %v2302_v37 = vsub.f32 %v2298_v35, %v2300_v34 }
0x1429   :  { %v2307_v38 = vadd.f32 1e-05, %v2303_v36 }
0x142a   :  { %v2306_v22 = vadd.f32 1e-05, %v2302_v37 }
0x142b   :  { %2774 = vrsqrt.f32 %v2307_v38 }
0x142c   :  { %2776 = vrsqrt.f32 %v2306_v22 }
0x1435   :  { %v2775_v20 = vpop.eup %2774 }
0x1436   :  { %v2777_v44 = vpop.eup %2776  ;;  %v2311_v45 = vmul.f32 %v2775_v20, %v2305_v41 }
0x1437   :  { %v2310_v19 = vmul.f32 %v2777_v44, %v2304_v43 }
0x1438   :  { %v2317_v48 = vmul.f32 %v2315_v42, %v2311_v45 }
0x1439   :  { %v2316_v49 = vmul.f32 %v2315_v42, %v2310_v19 }
0x143a   :  { %v2323_v50 = vadd.f32 %v2321_v21, %v2317_v48 }
0x143b   :  { %v2322_v8 = vadd.f32 %v2321_v21, %v2316_v49 }
0x143c   :  { %2325 = vst.msk [vmem:[#allocation2 + $0x8] sm:$0xff] %vm2047_vm3, %v2323_v50 }
0x143d   :  { %2324 = vst.msk [vmem:[#allocation2] sm:$0xff] %vm2047_vm3, %v2322_v8 }
0x143e   :  { %2789 = shalt.err (!%p2786_p4)
}
0x143f   :  { %s2790_s14 = scalar_lea.hbm %s3238_s7, 256 }
0x1440   :  { %p2791_p5 = scmp.ne.s32.totalorder %s3238_s7, %s2790_s14  ;;  %p2794_p6 = scmp.lt.u32.totalorder %s2790_s14, %s3238_s7 }
0x1442   :  { %p2796_p7 = pnand %p2794_p6, %p2791_p5 }
0x1444   :  { %2799 = shalt.err (!%p2796_p7)
}
0x1445   :  { %s2816_s19 = smov 128   ;;  %s2817_s20 = smov 8  }
0x1446   :  { %2337 = dma.vmem_to_hbm [thread:$0]  %s2332_s5, 256, %s3238_s7, [#allocation3], %s2816_s19, %s2816_s19, %s2817_s20  }
0x1447   :  { %2800 = dma.done.wait [#allocation3], 256  }
0x1448   :  { %2801 = vsyncadd [#allocation3], 4294967040 }
0x1449   :  { %2341 = vsyncpa [#allocation3], 1 }

</bundles_post_ra>
